<compile_context>
chip_gen: v7x
topology: tpu7x:2x2x1
jax: 0.10.0
libtpu: 0.0.40
codegen_flags: <defaults>
</compile_context>

<pallas_src>
import functools

import jax
import jax.numpy as jnp
from jax.experimental import pallas as pl
from jax.experimental.pallas import tpu as pltpu


def _round_up(x, m):
    return (x + m - 1) // m * m


def _cdiv(a, b):
    return (a + b - 1) // b


def _vmem_capacity_bytes():
    """Generation-aware VMEM capacity (falls back to the v7x-safe 64 MiB)."""
    try:
        return int(pltpu.get_tpu_info().vmem_capacity_bytes)
    except Exception:
        return 64 * 1024 * 1024


def _encoder_kernel(x_ref, w_ref, o_ref):
    """One (tm, tn) output tile: in-VMEM cast + full-K matmul + fused ReLU."""
    x = x_ref[...].astype(w_ref.dtype)  # f32 -> compute dtype, in VMEM (no host pass)
    y = jnp.dot(x, w_ref[...], preferred_element_type=jnp.float32)
    o_ref[...] = jnp.maximum(y, 0.0).astype(o_ref.dtype)


@functools.partial(jax.jit,
                   static_argnames=("tm", "tn", "compute_dtype", "out_dtype"))
def encoder_forward(x, w, *, tm=512, tn=512,
                    compute_dtype=jnp.bfloat16, out_dtype=jnp.float32):
    """relu(x @ w) via a streaming Pallas GEMM.

    x: (N, in_dim) float32            (dense stand-in for the sparse attr_matrix)
    w: (in_dim, num_hidden) float32   (PyTorch MixedLinear weight, transposed)
    returns: (N, num_hidden) out_dtype
    """
    N, K = x.shape
    K2, H = w.shape
    assert K == K2

    lane = 128
    itemsize = jnp.dtype(compute_dtype).itemsize
    out_itemsize = jnp.dtype(out_dtype).itemsize
    sub_c = 16 if itemsize == 2 else 8      # sublane granule of compute dtype
    sub_o = 16 if out_itemsize == 2 else 8
    K_lane = _round_up(K, lane)             # lane padding of the x tile
    K_sub = _round_up(K, sub_c)             # sublane padding of the w tile

    # ---- column (H) tiling: lane-dense, tn a near-divisor of padded H -------
    H_pad0 = _round_up(H, lane)
    tn = max(lane, min(tn, H_pad0))
    n_h_blocks = _cdiv(H_pad0, tn)
    align_n = 256 if (H_pad0 % 256 == 0 and tn >= 256) else lane
    tn = _round_up(_cdiv(H_pad0, n_h_blocks), align_n)
    n_h_blocks = _cdiv(H_pad0, tn)
    H_pad = n_h_blocks * tn

    # ---- row (N) tiling (round DOWN so tm <= N; edge block is masked) -------
    if N <= sub_c:
        tm = N                                            # full-dim block
    else:
        tm = max(sub_c, (min(tm, N) // sub_c) * sub_c)

    # ---- VMEM budgeting (layout-padding aware, generation aware) ------------
    vmem_cap = _vmem_capacity_bytes()
    budget = int(vmem_cap * 0.65)   # ~42 MiB on v7x, ~83 MiB on v5e/v6e

    def vmem_need(tm_, tn_, w_bufs=2):
        x_tile = _round_up(tm_, 8) * K_lane * 4                # x loaded as f32
        xc_tile = _round_up(tm_, sub_c) * K_lane * itemsize    # in-kernel cast
        w_tile = K_sub * tn_ * itemsize
        o_tile = _round_up(tm_, sub_o) * tn_ * out_itemsize
        return 2 * x_tile + xc_tile + w_bufs * w_tile + 2 * o_tile

    # Shrink tm first (x / out terms), then tn (weight-tile floor).
    while vmem_need(tm, tn) > budget:
        if N > sub_c and tm > sub_c:
            tm = max(sub_c, ((tm // 2) // sub_c) * sub_c)
        elif tn > lane:
            tn = max(lane, ((tn // 2) // lane) * lane)
            n_h_blocks = _cdiv(H_pad0, tn)
            H_pad = n_h_blocks * tn
        else:
            # TODO(synk): K grid axis + accumulator scratch for huge in_dim.
            break

    # Single-buffer the resident weight only if that is what it takes to fit.
    w_bufs = 2
    if vmem_need(tm, tn, 2) > budget and vmem_need(tm, tn, 1) <= budget:
        w_bufs = 1

    m_blocks = _cdiv(N, tm)
    # v7x megacore: make sure the parallel row axis has >= 2 blocks.
    if m_blocks * n_h_blocks == 1 and N >= 2 * sub_c:
        tm = max(sub_c, (_cdiv(N, 2) // sub_c) * sub_c)
        m_blocks = _cdiv(N, tm)

    # ---- weight: cast (+ pad H) on host; tiny compared with x ---------------
    w_p = w.astype(compute_dtype)
    if H_pad != H:
        w_p = jnp.pad(w_p, ((0, 0), (0, H_pad - H)))

    # H outer / N inner: weight block index constant along the fast axis.
    grid = (n_h_blocks, m_blocks)

    w_spec_kwargs = {}
    if w_bufs == 1:
        w_spec_kwargs["pipeline_mode"] = pl.Buffered(1)
    in_specs = [
        pl.BlockSpec((tm, K), lambda j, i: (i, 0)),                    # x (f32)
        pl.BlockSpec((K, tn), lambda j, i: (0, j), **w_spec_kwargs),   # w (resident)
    ]
    out_spec = pl.BlockSpec((tm, tn), lambda j, i: (i, j))

    cost = pl.CostEstimate(
        flops=2 * N * K * H_pad,
        transcendentals=0,
        bytes_accessed=int(N * K * 4 * n_h_blocks        # x re-read per H block
                           + K_sub * H_pad * itemsize    # weight read once
                           + N * H_pad * out_itemsize),  # output writeback
    )

    vmem_limit = int(min(vmem_cap,
                         max(32 * 1024 * 1024,
                             vmem_need(tm, tn, w_bufs) + (8 << 20))))

    out = pl.pallas_call(
        _encoder_kernel,
        out_shape=jax.ShapeDtypeStruct((N, H_pad), out_dtype),
        grid=grid,
        in_specs=in_specs,
        out_specs=out_spec,
        compiler_params=pltpu.CompilerParams(
            dimension_semantics=("parallel", "parallel"),
            vmem_limit_bytes=vmem_limit,
        ),
        cost_estimate=cost,
    )(x, w_p)

    if H_pad != H:
        out = out[:, :H]
    return out


if __name__ == "__main__":
    # Small, deliberately non-aligned shapes: N nodes, in_dim features,
    # num_hidden units (exercises the masked edge row block + H lane padding).
    N, in_dim, num_hidden = 200, 192, 96

    key = jax.random.PRNGKey(0)
    kx, kw = jax.random.split(key)

    # Node feature matrix (dense stand-in for the sparse attr_matrix).
    x = jax.random.normal(kx, (N, in_dim), dtype=jnp.float32)

    # MixedLinear weight, PyTorch shape (num_hidden, in_dim), Kaiming-uniform-
    # like init with bias=False; the kernel consumes its transpose.
    bound = (6.0 / in_dim) ** 0.5
    w_pt = jax.random.uniform(
        kw, (num_hidden, in_dim), dtype=jnp.float32, minval=-bound, maxval=bound
    )
    w = w_pt.T  # (in_dim, num_hidden)

    # Plain-JAX reference of the Encoder forward (feat_drop = 0).
    ref = jnp.maximum(
        jnp.dot(x, w, precision=jax.lax.Precision.HIGHEST), 0.0
    )

    # Default path: bf16 operands (cast in-kernel), f32 accumulation, f32 out.
    out_bf16 = encoder_forward(x, w)
    jax.block_until_ready(out_bf16)
    assert out_bf16.shape == (N, num_hidden)
    assert jnp.allclose(out_bf16, ref, atol=5e-2, rtol=5e-2)

    # Full-f32 compute path, tighter tolerance.
    out_f32 = encoder_forward(x, w, compute_dtype=jnp.float32)
    jax.block_until_ready(out_f32)
    assert out_f32.shape == (N, num_hidden)
    assert jnp.allclose(out_f32, ref, atol=2e-3, rtol=2e-3)

    # bf16 output path (halved writeback traffic).
    out_bb = encoder_forward(x, w, compute_dtype=jnp.bfloat16,
                             out_dtype=jnp.bfloat16)
    jax.block_until_ready(out_bb)
    assert out_bb.shape == (N, num_hidden)
    assert jnp.allclose(out_bb.astype(jnp.float32), ref, atol=6e-2, rtol=6e-2)

    print("KERNEL_OK")
</pallas_src>

<mosaic_0001>
module attributes {stable_mosaic.version = 11 : i64} {
  func.func @_encoder_kernel(%arg0: i32, %arg1: i32, %arg2: memref<192x192xf32, #tpu.memory_space<vmem>>, %arg3: memref<192x128xbf16, #tpu.memory_space<vmem>>, %arg4: memref<192x128xf32, #tpu.memory_space<vmem>>) attributes {dimension_semantics = [#tpu.dimension_semantics<parallel>, #tpu.dimension_semantics<parallel>], iteration_bounds = array<i64: 1, 2>, scalar_prefetch = 0 : i64, scratch_operands = 0 : i64, tpu.core_type = #tpu.core_type<tc>, window_params = [{transform_indices = @transform_0, window_bounds = array<i64: 192, 192>}, {transform_indices = @transform_1, window_bounds = array<i64: 192, 128>}, {transform_indices = @transform_2, window_bounds = array<i64: 192, 128>}]} {
    %c0 = arith.constant 0 : index
    %c0_0 = arith.constant 0 : index
    %0 = vector.load %arg2[%c0, %c0_0] : memref<192x192xf32, #tpu.memory_space<vmem>>, vector<192x192xf32>
    %1 = arith.truncf %0 : vector<192x192xf32> to vector<192x192xbf16>
    %c0_1 = arith.constant 0 : index
    %c0_2 = arith.constant 0 : index
    %2 = vector.load %arg3[%c0_1, %c0_2] : memref<192x128xbf16, #tpu.memory_space<vmem>>, vector<192x128xbf16>
    %cst = arith.constant dense<0.000000e+00> : vector<192x128xf32>
    %3 = tpu.matmul %1, %2, %cst {dimension_numbers = #tpu.dot_dimension_numbers<[1], [0], [0], [1], [0, 0, 1, 1], [], []>} : vector<192x192xbf16>, vector<192x128xbf16>, vector<192x128xf32> -> vector<192x128xf32>
    %cst_3 = arith.constant 0.000000e+00 : f32
    %4 = vector.broadcast %cst_3 : f32 to vector<192x128xf32>
    %5 = arith.maximumf %3, %4 : vector<192x128xf32>
    %c0_4 = arith.constant 0 : index
    %c0_5 = arith.constant 0 : index
    %6 = vector.load %arg4[%c0_4, %c0_5] : memref<192x128xf32, #tpu.memory_space<vmem>>, vector<192x128xf32>
    tpu.vector_store %arg4[%c0_4, %c0_5], %5 {strides = array<i32>} : memref<192x128xf32, #tpu.memory_space<vmem>>, vector<192x128xf32>,
    return
  }
  func.func @transform_0(%arg0: i32, %arg1: i32) -> (i32, i32) {
    %c0_i32 = arith.constant 0 : i32
    %c0_i32_0 = arith.constant 0 : i32
    return %arg1, %c0_i32 : i32, i32
  }
  func.func @transform_1(%arg0: i32, %arg1: i32) -> (i32, i32) {
    %c0_i32 = arith.constant 0 : i32
    %c0_i32_0 = arith.constant 0 : i32
    return %c0_i32, %arg0 : i32, i32
  }
  func.func @transform_2(%arg0: i32, %arg1: i32) -> (i32, i32) {
    %c0_i32 = arith.constant 0 : i32
    return %arg1, %arg0 : i32, i32
  }
}

</mosaic_0001>

<bundles_post_ra>
// kernel: encoder_forward.1
= control target key start
LH: loop header
LB: loop body
LE: loop exit
PB: predicated region body
PF: predicated region fallthrough
CT: control target
= control target key end

     0   :  { %s1235_s9 = smov 0   ;;  %s1237_s10 = smov 0   ;;  %s1555_s0 = inlined_call_operand.vmem [shape: f32[200,192], index: 0, kind: input, shape index: {}]   ;;  %s1556_s1 = inlined_call_operand.vmem [shape: bf16[192,128], index: 1, kind: input, shape index: {}]   ;;  %s1557_s2 = inlined_call_operand.vmem [shape: f32[200,128], index: 2, kind: output, shape index: {}]  }
   0x1   :  { %s1239_s11 = smov 0   ;;  %s1241_s12 = smov 0  }
   0x2   :  { %s1243_s13 = smov 0  }
   0x3 LB: > { %s922_s14 = sadd.s32 4294967295, %s1185_s13   ;;  %s21_s15 = sadd.s32 1, %s1181_s12  ;;  %s1185_s13 = sphi %s1243_s13, %s12_s13   ;;  %s1181_s12 = sphi %s1241_s12, %s1566_s12   ;;  %s1177_s11 = sphi %s1239_s11, %s1565_s11   ;;  %s1173_s10 = sphi %s1237_s10, %s1564_s10   ;;  %s1169_s9 = sphi %s1235_s9, %s1563_s9  }
   0x4   : > { %p22_p0 = scmp.ge.s32.totalorder %s21_s15, 2  ;;  %s85_s16 = sadd.s32 1, %s1173_s10 }
   0x5   : > { %p95_p1 = scmp.ne.s32.totalorder %s1173_s10, %s1169_s9  ;;  %p96_p2 = scmp.eq.s32.totalorder %s922_s14, 1 }
   0x6   : > { %s1568_s15 = smov (%p22_p0, %s21_s15), 0  ;;  %p927_p4 = scmp.ge.s32.totalorder %s1185_s13, 1 }
   0x7   : > { %p1267_p3 = por %p96_p2, %p95_p1  ;;  %s80_s18 = ssub.s32 %s1181_s12, %s1568_s15 }
   0x8   : > { %p147_p5 = scmp.lt.s32.totalorder %s1185_s13, 3  ;;  %p83_p6 = scmp.eq.s32.totalorder %s80_s18, 0 }
   0xa   : > { %p148_p7 = pnand %p927_p4, %p147_p5 }
   0xb   : > { %s1276_s19 = scalar_select %p83_p6, %s1173_s10, %s85_s16  }
   0xc   : > { %151 = sbr.rel (%p148_p7) target bundleno = 382 (0x17e), region = 28  ;;  %v1099_v0 = vld [vmem:[%s1556_s1] sm:$0xff] (!%p148_p7)   ;;  %v1219_v1 = vmov (!%p148_p7), 0   ;;  %v1100_v2 = vld [vmem:[%s1556_s1 + $0x8] sm:$0xff] (!%p148_p7)   ;;  %v1101_v3 = vld [vmem:[%s1556_s1 + $0x10] sm:$0xff] (!%p148_p7)   ;;  %vm373_vm0 = vcmask (!%p148_p7), 523264  }
   0xd   : > { %410 = vmatprep.subr.bf16.mxu0 (!%p148_p7), %v1219_v1  ;;  %968 = vmatprep.subr.bf16.mxu1 (!%p148_p7), %v1219_v1  ;;  %s1284_s22 = smul.u32 (!%p148_p7), 24, %s1177_s11  ;;  %v1102_v4 = vld [vmem:[%s1556_s1 + $0x18] sm:$0xff] (!%p148_p7)   ;;  %v1103_v10 = vld [vmem:[%s1556_s1 + $0x20] sm:$0xff] (!%p148_p7)   ;;  %v1104_v12 = vld [vmem:[%s1556_s1 + $0x28] sm:$0xff] (!%p148_p7)   ;;  %s175_s4 = sand.u32 (!%p148_p7), 1, %s1169_s9  }
   0xe   : > { %411 = vmatpush1.bf16.msra.mxu0 (!%p148_p7), %v1099_v0  ;;  %980 = vmatpush1.bf16.msra.mxu1 (!%p148_p7), %v1099_v0  ;;  %v1105_v13 = vld [vmem:[%s1556_s1 + $0x30] sm:$0xff] (!%p148_p7)   ;;  %v1106_v14 = vld [vmem:[%s1556_s1 + $0x38] sm:$0xff] (!%p148_p7)   ;;  %v1107_v15 = vld [vmem:[%s1556_s1 + $0x40] sm:$0xff] (!%p148_p7)   ;;  %s992_s5 = smul.u32 (!%p148_p7), 192, %s175_s4 }
   0xf   : > { %412 = vmatprep.subr.bf16.mxu0 (!%p148_p7), %v1219_v1  ;;  %969 = vmatprep.subr.bf16.mxu1 (!%p148_p7), %v1219_v1  ;;  %p184_p8 = scmp.lt.s32.totalorder (!%p148_p7), %s1284_s22, 24  ;;  %v1108_v16 = vld [vmem:[%s1556_s1 + $0x48] sm:$0xff] (!%p148_p7)   ;;  %v1109_v17 = vld [vmem:[%s1556_s1 + $0x50] sm:$0xff] (!%p148_p7)   ;;  %v1110_v18 = vld [vmem:[%s1556_s1 + $0x58] sm:$0xff] (!%p148_p7)  }
  0x10   : > { %s1409_s6 = scalar_lea.vmem (!%p148_p7), [#allocation2], %s992_s5  }
  0x12   : > { %413 = vmatpush1.bf16.msra.mxu0 (!%p148_p7), %v1100_v2  ;;  %981 = vmatpush1.bf16.msra.mxu1 (!%p148_p7), %v1100_v2 }
  0x13   : > { %s185_s25 = scalar_select %p184_p8, %s1284_s22, 24  ;;  %414 = vmatprep.subr.bf16.mxu0 %v1219_v1  ;;  %970 = vmatprep.subr.bf16.mxu1 %v1219_v1 }
  0x14   : > { %s595_s9 = ssub.s32 (%p1267_p3), 25, %s1284_s22 }
  0x15   : > { %s966_s28 = sshll.u32 %s185_s25, 4  ;;  %p596_p9 = scmp.lt.s32.totalorder (%p1267_p3), %s595_s9, 24 }
  0x16   : > { %s1301_s3 = scalar_lea.vmem %s1555_s0, %s966_s28  ;;  %415 = vmatpush1.bf16.msra.mxu0 %v1101_v3  ;;  %982 = vmatpush1.bf16.msra.mxu1 %v1101_v3 }
  0x17   : > { %416 = vmatprep.subr.bf16.mxu0 %v1219_v1  ;;  %971 = vmatprep.subr.bf16.mxu1 %v1219_v1  ;;  %v206_v5 = vld [vmem:[%s1301_s3 + $0x8] sm:$0xff]  ;;  %v208_v6 = vld [vmem:[%s1301_s3 + $0x18] sm:$0xff]  ;;  %v205_v19 = vld [vmem:[%s1301_s3] sm:$0xff] }
  0x18   : > { %v230_v7 = vld [vmem:[%s1301_s3 + $0xc8] sm:$0xff]  ;;  %v254_v8 = vpack.c.bf16 %v208_v6, %v206_v5  ;;  %v232_v9 = vld [vmem:[%s1301_s3 + $0xd8] sm:$0xff]  ;;  %v207_v20 = vld [vmem:[%s1301_s3 + $0x10] sm:$0xff] }
  0x19   : > { %v266_v11 = vpack.c.bf16 %v232_v9, %v230_v7  ;;  %v229_v21 = vld [vmem:[%s1301_s3 + $0xc0] sm:$0xff]  ;;  %v231_v22 = vld [vmem:[%s1301_s3 + $0xd0] sm:$0xff]  ;;  %v210_v23 = vld [vmem:[%s1301_s3 + $0x28] sm:$0xff]  ;;  %v253_v27 = vpack.c.bf16 %v207_v20, %v205_v19 }
  0x1a   : > { %417 = vmatpush1.bf16.msra.mxu0 %v1102_v4  ;;  %983 = vmatpush1.bf16.msra.mxu1 %v1102_v4  ;;  %v212_v24 = vld [vmem:[%s1301_s3 + $0x38] sm:$0xff]  ;;  %v234_v25 = vld [vmem:[%s1301_s3 + $0xe8] sm:$0xff]  ;;  %v265_v28 = vpack.c.bf16 %v231_v22, %v229_v21  ;;  %v209_v31 = vld [vmem:[%s1301_s3 + $0x20] sm:$0xff] }
  0x1b   : > { %418 = vmatprep.subr.bf16.mxu0 %v1219_v1  ;;  %972 = vmatprep.subr.bf16.mxu1 %v1219_v1  ;;  %v236_v26 = vld [vmem:[%s1301_s3 + $0xf8] sm:$0xff]  ;;  %v256_v29 = vpack.c.bf16 %v212_v24, %v210_v23  ;;  %v211_v32 = vld [vmem:[%s1301_s3 + $0x30] sm:$0xff]  ;;  %v233_v33 = vld [vmem:[%s1301_s3 + $0xe0] sm:$0xff] }
  0x1c   : > { %942 = vmatprep.mubr.msk.bf16.mxu0 %vm373_vm0, %v254_v8  ;;  %948 = vmatprep.mubr.msk.bf16.mxu1 %vm373_vm0, %v266_v11  ;;  %v268_v30 = vpack.c.bf16 %v236_v26, %v234_v25  ;;  %v235_v34 = vld [vmem:[%s1301_s3 + $0xf0] sm:$0xff]  ;;  %v214_v35 = vld [vmem:[%s1301_s3 + $0x48] sm:$0xff]  ;;  %v216_v36 = vld [vmem:[%s1301_s3 + $0x58] sm:$0xff]  ;;  %v255_v39 = vpack.c.bf16 %v211_v32, %v209_v31 }
  0x1d   : > { %v238_v37 = vld [vmem:[%s1301_s3 + $0x108] sm:$0xff]  ;;  %v240_v38 = vld [vmem:[%s1301_s3 + $0x118] sm:$0xff]  ;;  %v267_v40 = vpack.c.bf16 %v235_v34, %v233_v33  ;;  %v258_v41 = vpack.c.bf16 %v216_v36, %v214_v35  ;;  %v213_v43 = vld [vmem:[%s1301_s3 + $0x40] sm:$0xff] }
  0x1e   : > { %419 = vmatpush1.bf16.msra.mxu0 %v1103_v10  ;;  %984 = vmatpush1.bf16.msra.mxu1 %v1103_v10  ;;  %v270_v42 = vpack.c.bf16 %v240_v38, %v238_v37  ;;  %v215_v44 = vld [vmem:[%s1301_s3 + $0x50] sm:$0xff]  ;;  %v237_v45 = vld [vmem:[%s1301_s3 + $0x100] sm:$0xff]  ;;  %v218_v47 = vld [vmem:[%s1301_s3 + $0x68] sm:$0xff] }
  0x1f   : > { %420 = vmatprep.subr.bf16.mxu0 %v1219_v1  ;;  %973 = vmatprep.subr.bf16.mxu1 %v1219_v1  ;;  %v239_v46 = vld [vmem:[%s1301_s3 + $0x110] sm:$0xff]  ;;  %v220_v48 = vld [vmem:[%s1301_s3 + $0x78] sm:$0xff]  ;;  %v242_v49 = vld [vmem:[%s1301_s3 + $0x128] sm:$0xff]  ;;  %v257_v51 = vpack.c.bf16 %v215_v44, %v213_v43 }
  0x20   : > { %v244_v50 = vld [vmem:[%s1301_s3 + $0x138] sm:$0xff]  ;;  %v269_v52 = vpack.c.bf16 %v239_v46, %v237_v45  ;;  %v260_v53 = vpack.c.bf16 %v220_v48, %v218_v47  ;;  %v217_v55 = vld [vmem:[%s1301_s3 + $0x60] sm:$0xff]  ;;  %v219_v56 = vld [vmem:[%s1301_s3 + $0x70] sm:$0xff] }
  0x21   : > { %v272_v54 = vpack.c.bf16 %v244_v50, %v242_v49  ;;  %v241_v57 = vld [vmem:[%s1301_s3 + $0x120] sm:$0xff]  ;;  %v243_v58 = vld [vmem:[%s1301_s3 + $0x130] sm:$0xff]  ;;  %v222_v59 = vld [vmem:[%s1301_s3 + $0x88] sm:$0xff]  ;;  %v259_v63 = vpack.c.bf16 %v219_v56, %v217_v55 }
  0x22   : > { %421 = vmatpush1.bf16.msra.mxu0 %v1104_v12  ;;  %985 = vmatpush1.bf16.msra.mxu1 %v1104_v12  ;;  %v224_v60 = vld [vmem:[%s1301_s3 + $0x98] sm:$0xff]  ;;  %v246_v61 = vld [vmem:[%s1301_s3 + $0x148] sm:$0xff]  ;;  %v271_v0 = vpack.c.bf16 %v243_v58, %v241_v57  ;;  %v221_v3 = vld [vmem:[%s1301_s3 + $0x80] sm:$0xff] }
  0x23   : > { %422 = vmatprep.subr.bf16.mxu0 %v1219_v1  ;;  %974 = vmatprep.subr.bf16.mxu1 %v1219_v1  ;;  %v248_v62 = vld [vmem:[%s1301_s3 + $0x158] sm:$0xff]  ;;  %v223_v4 = vld [vmem:[%s1301_s3 + $0x90] sm:$0xff]  ;;  %v245_v5 = vld [vmem:[%s1301_s3 + $0x140] sm:$0xff] }
  0x24   : > { %v274_v2 = vpack.c.bf16 %v248_v62, %v246_v61  ;;  %v247_v6 = vld [vmem:[%s1301_s3 + $0x150] sm:$0xff]  ;;  %v226_v7 = vld [vmem:[%s1301_s3 + $0xa8] sm:$0xff]  ;;  %v228_v8 = vld [vmem:[%s1301_s3 + $0xb8] sm:$0xff]  ;;  %v261_v11 = vpack.c.bf16 %v223_v4, %v221_v3 }
  0x25   : > { %v250_v9 = vld [vmem:[%s1301_s3 + $0x168] sm:$0xff]  ;;  %v252_v10 = vld [vmem:[%s1301_s3 + $0x178] sm:$0xff]  ;;  %v273_v12 = vpack.c.bf16 %v247_v6, %v245_v5 }
  0x26   : > { %423 = vmatpush1.bf16.msra.mxu0 %v1105_v13  ;;  %986 = vmatpush1.bf16.msra.mxu1 %v1105_v13  ;;  %v264_v13 = vpack.c.bf16 %v228_v8, %v226_v7 }
  0x27   : > { %424 = vmatprep.subr.bf16.mxu0 %v1219_v1  ;;  %975 = vmatprep.subr.bf16.mxu1 %v1219_v1 }
  0x2a   : > { %425 = vmatpush1.bf16.msra.mxu0 %v1106_v14  ;;  %987 = vmatpush1.bf16.msra.mxu1 %v1106_v14  ;;  %v276_v14 = vpack.c.bf16 %v252_v10, %v250_v9 }
  0x2b   : > { %426 = vmatprep.subr.bf16.mxu0 %v1219_v1  ;;  %976 = vmatprep.subr.bf16.mxu1 %v1219_v1 }
  0x2e   : > { %427 = vmatpush1.bf16.msra.mxu0 %v1107_v15  ;;  %988 = vmatpush1.bf16.msra.mxu1 %v1107_v15  ;;  %v225_v15 = vld [vmem:[%s1301_s3 + $0xa0] sm:$0xff] }
  0x2f   : > { %428 = vmatprep.subr.bf16.mxu0 %v1219_v1  ;;  %977 = vmatprep.subr.bf16.mxu1 %v1219_v1 }
  0x32   : > { %429 = vmatpush1.bf16.msra.mxu0 %v1108_v16  ;;  %989 = vmatpush1.bf16.msra.mxu1 %v1108_v16  ;;  %v227_v16 = vld [vmem:[%s1301_s3 + $0xb0] sm:$0xff] }
  0x33   : > { %430 = vmatprep.subr.bf16.mxu0 %v1219_v1  ;;  %978 = vmatprep.subr.bf16.mxu1 %v1219_v1  ;;  %v263_v19 = vpack.c.bf16 %v227_v16, %v225_v15 }
  0x36   : > { %431 = vmatpush1.bf16.msra.mxu0 %v1109_v17  ;;  %990 = vmatpush1.bf16.msra.mxu1 %v1109_v17  ;;  %v249_v17 = vld [vmem:[%s1301_s3 + $0x160] sm:$0xff] }
  0x37   : > { %432 = vmatprep.subr.bf16.mxu0 %v1219_v1  ;;  %979 = vmatprep.subr.bf16.mxu1 %v1219_v1  ;;  %v262_v1 = vpack.c.bf16 %v224_v60, %v222_v59 }
  0x3a   : > { %433 = vmatpush1.bf16.msra.mxu0 %v1110_v18  ;;  %991 = vmatpush1.bf16.msra.mxu1 %v1110_v18  ;;  %v251_v18 = vld [vmem:[%s1301_s3 + $0x170] sm:$0xff]  ;;  %s967_s3 = smul.u32 (%p1267_p3), 192, %s1177_s11 }
  0x3b   : > { %v275_v20 = vpack.c.bf16 %v251_v18, %v249_v17 }
  0x3c   : > { %s1442_s14 = scalar_lea.vmem (%p1267_p3), %s1557_s2, %s967_s3  }
  0x3d   : > { %443 = vmatmul.mubr.bf16.vlgmr.msra.gmra.mrb[0].mxu0 %v253_v27  ;;  %491 = vmatmul.mubr.bf16.vlgmr.msra.gmra.mrb[0].mxu1 %v265_v28 }
  0x3e   : > { %943 = vmatprep.mubr.msk.bf16.mxu0 %vm373_vm0, %v256_v29  ;;  %949 = vmatprep.mubr.msk.bf16.mxu1 %vm373_vm0, %v268_v30 }
  0x45   : > { %451 = vmatmul.mubr.bf16.gmra.mrb[4].mxu0 %v255_v39  ;;  %499 = vmatmul.mubr.bf16.gmra.mrb[4].mxu1 %v267_v40 }
  0x46   : > { %944 = vmatprep.mubr.msk.bf16.mxu0 %vm373_vm0, %v258_v41  ;;  %950 = vmatprep.mubr.msk.bf16.mxu1 %vm373_vm0, %v270_v42 }
  0x4d   : > { %459 = vmatmul.mubr.bf16.gmra.mrb[8].mxu0 %v257_v51  ;;  %507 = vmatmul.mubr.bf16.gmra.mrb[8].mxu1 %v269_v52 }
  0x4e   : > { %945 = vmatprep.mubr.msk.bf16.mxu0 %vm373_vm0, %v260_v53  ;;  %951 = vmatprep.mubr.msk.bf16.mxu1 %vm373_vm0, %v272_v54 }
  0x55   : > { %467 = vmatmul.mubr.bf16.gmra.mrb[12].mxu0 %v259_v63  ;;  %515 = vmatmul.mubr.bf16.gmra.mrb[12].mxu1 %v271_v0 }
  0x56   : > { %946 = vmatprep.mubr.msk.bf16.mxu0 %vm373_vm0, %v262_v1  ;;  %952 = vmatprep.mubr.msk.bf16.mxu1 %vm373_vm0, %v274_v2 }
  0x5d   : > { %475 = vmatmul.mubr.bf16.gmra.mrb[16].mxu0 %v261_v11  ;;  %523 = vmatmul.mubr.bf16.gmra.mrb[16].mxu1 %v273_v12 }
  0x5e   : > { %947 = vmatprep.mubr.msk.bf16.mxu0 %vm373_vm0, %v264_v13  ;;  %953 = vmatprep.mubr.msk.bf16.mxu1 %vm373_vm0, %v276_v14 }
  0x65   : > { %483 = vmatmul.mubr.bf16.gmra.mrb[20].mxu0 %v263_v19  ;;  %531 = vmatmul.mubr.bf16.gmra.mrb[20].mxu1 %v275_v20 }
 0x110   : > { %v444_v21 = vpop.f32.mrb[0].mxu0  ;;  %v492_v22 = vpop.f32.mrb[0].mxu1 }
 0x111   : > { %v539_v23 = vmax.f32 %v444_v21, 0.0  ;;  %v551_v24 = vmax.f32 %v492_v22, 0.0  ;;  %v446_v25 = vpop.f32.mrb[1].mxu0  ;;  %v494_v26 = vpop.f32.mrb[1].mxu1 }
 0x112   : > { %v447_v27 = vpop.f32.mrb[2].mxu0  ;;  %v495_v28 = vpop.f32.mrb[2].mxu1 }
 0x113   : > { %563 = vst [vmem:[%s1409_s6] sm:$0xff] %v539_v23  ;;  %575 = vst [vmem:[%s1409_s6 + $0x60] sm:$0xff] %v551_v24  ;;  %v540_v29 = vmax.f32 %v447_v27, 0.0  ;;  %v552_v30 = vmax.f32 %v495_v28, 0.0  ;;  %v449_v31 = vpop.f32.mrb[3].mxu0  ;;  %v497_v32 = vpop.f32.mrb[3].mxu1 }
 0x115   : > { %564 = vst [vmem:[%s1409_s6 + $0x8] sm:$0xff] %v540_v29  ;;  %576 = vst [vmem:[%s1409_s6 + $0x68] sm:$0xff] %v552_v30 }
 0x118   : > { %v452_v33 = vpop.f32.mrb[4].mxu0  ;;  %v500_v34 = vpop.f32.mrb[4].mxu1 }
 0x119   : > { %v541_v35 = vmax.f32 %v452_v33, 0.0  ;;  %v553_v36 = vmax.f32 %v500_v34, 0.0  ;;  %v454_v37 = vpop.f32.mrb[5].mxu0  ;;  %v502_v38 = vpop.f32.mrb[5].mxu1 }
 0x11a   : > { %v455_v39 = vpop.f32.mrb[6].mxu0  ;;  %v503_v40 = vpop.f32.mrb[6].mxu1 }
 0x11b   : > { %565 = vst [vmem:[%s1409_s6 + $0x10] sm:$0xff] %v541_v35  ;;  %577 = vst [vmem:[%s1409_s6 + $0x70] sm:$0xff] %v553_v36  ;;  %v542_v41 = vmax.f32 %v455_v39, 0.0  ;;  %v554_v42 = vmax.f32 %v503_v40, 0.0  ;;  %v457_v43 = vpop.f32.mrb[7].mxu0  ;;  %v505_v44 = vpop.f32.mrb[7].mxu1 }
 0x11d   : > { %566 = vst [vmem:[%s1409_s6 + $0x18] sm:$0xff] %v542_v41  ;;  %578 = vst [vmem:[%s1409_s6 + $0x78] sm:$0xff] %v554_v42 }
 0x120   : > { %v460_v45 = vpop.f32.mrb[8].mxu0  ;;  %v508_v46 = vpop.f32.mrb[8].mxu1 }
 0x121   : > { %v543_v47 = vmax.f32 %v460_v45, 0.0  ;;  %v555_v48 = vmax.f32 %v508_v46, 0.0  ;;  %v462_v49 = vpop.f32.mrb[9].mxu0  ;;  %v510_v50 = vpop.f32.mrb[9].mxu1 }
 0x122   : > { %v463_v51 = vpop.f32.mrb[10].mxu0  ;;  %v511_v52 = vpop.f32.mrb[10].mxu1 }
 0x123   : > { %567 = vst [vmem:[%s1409_s6 + $0x20] sm:$0xff] %v543_v47  ;;  %579 = vst [vmem:[%s1409_s6 + $0x80] sm:$0xff] %v555_v48  ;;  %v544_v53 = vmax.f32 %v463_v51, 0.0  ;;  %v556_v54 = vmax.f32 %v511_v52, 0.0  ;;  %v465_v55 = vpop.f32.mrb[11].mxu0  ;;  %v513_v56 = vpop.f32.mrb[11].mxu1 }
 0x125   : > { %568 = vst [vmem:[%s1409_s6 + $0x28] sm:$0xff] %v544_v53  ;;  %580 = vst [vmem:[%s1409_s6 + $0x88] sm:$0xff] %v556_v54 }
 0x128   : > { %v468_v57 = vpop.f32.mrb[12].mxu0  ;;  %v516_v58 = vpop.f32.mrb[12].mxu1 }
 0x129   : > { %v545_v59 = vmax.f32 %v468_v57, 0.0  ;;  %v557_v60 = vmax.f32 %v516_v58, 0.0  ;;  %v470_v61 = vpop.f32.mrb[13].mxu0  ;;  %v518_v62 = vpop.f32.mrb[13].mxu1 }
 0x12a   : > { %v471_v63 = vpop.f32.mrb[14].mxu0  ;;  %v519_v0 = vpop.f32.mrb[14].mxu1 }
 0x12b   : > { %569 = vst [vmem:[%s1409_s6 + $0x30] sm:$0xff] %v545_v59  ;;  %581 = vst [vmem:[%s1409_s6 + $0x90] sm:$0xff] %v557_v60  ;;  %v546_v1 = vmax.f32 %v471_v63, 0.0  ;;  %v558_v2 = vmax.f32 %v519_v0, 0.0  ;;  %v473_v3 = vpop.f32.mrb[15].mxu0  ;;  %v521_v4 = vpop.f32.mrb[15].mxu1 }
 0x12d   : > { %570 = vst [vmem:[%s1409_s6 + $0x38] sm:$0xff] %v546_v1  ;;  %582 = vst [vmem:[%s1409_s6 + $0x98] sm:$0xff] %v558_v2 }
 0x130   : > { %v476_v5 = vpop.f32.mrb[16].mxu0  ;;  %v524_v6 = vpop.f32.mrb[16].mxu1 }
 0x131   : > { %v547_v7 = vmax.f32 %v476_v5, 0.0  ;;  %v559_v8 = vmax.f32 %v524_v6, 0.0  ;;  %v478_v9 = vpop.f32.mrb[17].mxu0  ;;  %v526_v10 = vpop.f32.mrb[17].mxu1 }
 0x132   : > { %v479_v11 = vpop.f32.mrb[18].mxu0  ;;  %v527_v12 = vpop.f32.mrb[18].mxu1 }
 0x133   : > { %571 = vst [vmem:[%s1409_s6 + $0x40] sm:$0xff] %v547_v7  ;;  %583 = vst [vmem:[%s1409_s6 + $0xa0] sm:$0xff] %v559_v8  ;;  %v548_v13 = vmax.f32 %v479_v11, 0.0  ;;  %v560_v14 = vmax.f32 %v527_v12, 0.0  ;;  %v481_v15 = vpop.f32.mrb[19].mxu0  ;;  %v529_v16 = vpop.f32.mrb[19].mxu1 }
 0x135   : > { %572 = vst [vmem:[%s1409_s6 + $0x48] sm:$0xff] %v548_v13  ;;  %584 = vst [vmem:[%s1409_s6 + $0xa8] sm:$0xff] %v560_v14 }
 0x137   : > { %593 = sbr.rel (!%p1267_p3) target bundleno = 382 (0x17e), region = 32 }
 0x138   : > { %v484_v17 = vpop.f32.mrb[20].mxu0  ;;  %v532_v18 = vpop.f32.mrb[20].mxu1 }
 0x139   : > { %v549_v19 = vmax.f32 %v484_v17, 0.0  ;;  %v561_v20 = vmax.f32 %v532_v18, 0.0  ;;  %v486_v21 = vpop.f32.mrb[21].mxu0  ;;  %v534_v22 = vpop.f32.mrb[21].mxu1 }
 0x13a   : > { %v487_v23 = vpop.f32.mrb[22].mxu0  ;;  %v535_v24 = vpop.f32.mrb[22].mxu1 }
 0x13b   : > { %573 = vst [vmem:[%s1409_s6 + $0x50] sm:$0xff] %v549_v19  ;;  %585 = vst [vmem:[%s1409_s6 + $0xb0] sm:$0xff] %v561_v20  ;;  %v550_v25 = vmax.f32 %v487_v23, 0.0  ;;  %v562_v26 = vmax.f32 %v535_v24, 0.0  ;;  %v489_v27 = vpop.f32.mrb[23].mxu0  ;;  %v537_v28 = vpop.f32.mrb[23].mxu1 }
 0x13d   : > { %574 = vst [vmem:[%s1409_s6 + $0x58] sm:$0xff] %v550_v25  ;;  %586 = vst [vmem:[%s1409_s6 + $0xb8] sm:$0xff] %v562_v26 }
 0x13e   : > { %s1570_s9 = smov (!%p596_p9, %s595_s9), 24 }
 0x13f   : > { %s954_s16 = sshll.u32 %s1570_s9, 7 }
 0x140   : > { %p957_p10 = scmp.eq.s32.totalorder %s954_s16, 0 }
 0x141   : > { %1111 = sdivrem.u32 (!%p957_p10), %s1570_s9, 24 }
 0x142   : > { %605 = sbr.rel (%p957_p10) target bundleno = 382 (0x17e), region = 36 }
 0x14a   : > { %s1448_s17 = spop.drf %1111 }
 0x14b   : > { %p958_p11 = scmp.le.s32.totalorder %s1448_s17, 0 }
 0x14c   : > { %s1559_s11 = smov (!%p958_p11), %s1442_s14  ;;  %s1560_s22 = smov (!%p958_p11), %s1409_s6 }
 0x14d   : > { %861 = sbr.rel (%p958_p11) target bundleno = 353 (0x161), region = 115  ;;  %s1457_s18 = smov (!%p958_p11), 0  }
 0x14e   : > { %s1459_s20 = smov (!%p958_p11), 0  }
 0x154 LB: >> { %v715_v29 = vld [vmem:[%s1193_s22] sm:$0xff]  ;;  %v717_v30 = vld [vmem:[%s1193_s22 + $0x8] sm:$0xff]  ;;  %v719_v31 = vld [vmem:[%s1193_s22 + $0x10] sm:$0xff]  ;;  %s763_s21 = sadd.s32 1, %s1197_s18  ;;  %s709_s20 = sadd.s32 1, %s1201_s20   ;;  %s1201_s20 = sphi %s1459_s20, %s709_s20   ;;  %s1197_s18 = sphi %s1457_s18, %s1562_s18   ;;  %s1193_s22 = sphi %s1560_s22, %s768_s22   ;;  %s1189_s11 = sphi %s1559_s11, %s1561_s11  }
 0x155   : >> { %716 = vst [vmem:[%s1189_s11] sm:$0xff] %v715_v29  ;;  %718 = vst [vmem:[%s1189_s11 + $0x8] sm:$0xff] %v717_v30  ;;  %v721_v32 = vld [vmem:[%s1193_s22 + $0x18] sm:$0xff]  ;;  %v723_v33 = vld [vmem:[%s1193_s22 + $0x20] sm:$0xff]  ;;  %p764_p12 = scmp.ge.s32.totalorder %s763_s21, %s1448_s17  ;;  %p708_p13 = scmp.ge.s32.totalorder %s709_s20, %s1448_s17 }
 0x156   : >> { %720 = vst [vmem:[%s1189_s11 + $0x10] sm:$0xff] %v719_v31  ;;  %v725_v34 = vld [vmem:[%s1193_s22 + $0x28] sm:$0xff]  ;;  %722 = vst [vmem:[%s1189_s11 + $0x18] sm:$0xff] %v721_v32  ;;  %v727_v35 = vld [vmem:[%s1193_s22 + $0x30] sm:$0xff] }
 0x157   : >> { %724 = vst [vmem:[%s1189_s11 + $0x20] sm:$0xff] %v723_v33  ;;  %726 = vst [vmem:[%s1189_s11 + $0x28] sm:$0xff] %v725_v34  ;;  %v729_v36 = vld [vmem:[%s1193_s22 + $0x38] sm:$0xff]  ;;  %v731_v37 = vld [vmem:[%s1193_s22 + $0x40] sm:$0xff]  ;;  %s1572_s21 = smov (%p764_p12, %s763_s21), 0 }
 0x158   : >> { %728 = vst [vmem:[%s1189_s11 + $0x30] sm:$0xff] %v727_v35  ;;  %730 = vst [vmem:[%s1189_s11 + $0x38] sm:$0xff] %v729_v36  ;;  %v733_v38 = vld [vmem:[%s1193_s22 + $0x48] sm:$0xff]  ;;  %v735_v39 = vld [vmem:[%s1193_s22 + $0x50] sm:$0xff]  ;;  %s766_s23 = smul.u32 192, %s1572_s21  ;;  %s1562_s18 = smov %s1572_s21 }
 0x159   : >> { %732 = vst [vmem:[%s1189_s11 + $0x40] sm:$0xff] %v731_v37  ;;  %v737_v40 = vld [vmem:[%s1193_s22 + $0x58] sm:$0xff]  ;;  %734 = vst [vmem:[%s1189_s11 + $0x48] sm:$0xff] %v733_v38  ;;  %v739_v41 = vld [vmem:[%s1193_s22 + $0x60] sm:$0xff] }
 0x15a   : >> { %736 = vst [vmem:[%s1189_s11 + $0x50] sm:$0xff] %v735_v39  ;;  %738 = vst [vmem:[%s1189_s11 + $0x58] sm:$0xff] %v737_v40  ;;  %v741_v42 = vld [vmem:[%s1193_s22 + $0x68] sm:$0xff]  ;;  %v743_v43 = vld [vmem:[%s1193_s22 + $0x70] sm:$0xff]  ;;  %s769_s24 = scalar_lea.vmem %s1442_s14, %s766_s23   ;;  %711 = sbr.rel (!%p708_p13) target bundleno = 340 (0x154), region = 121 }
 0x15b   : >> { %740 = vst [vmem:[%s1189_s11 + $0x60] sm:$0xff] %v739_v41  ;;  %742 = vst [vmem:[%s1189_s11 + $0x68] sm:$0xff] %v741_v42  ;;  %v745_v44 = vld [vmem:[%s1193_s22 + $0x78] sm:$0xff]  ;;  %v747_v45 = vld [vmem:[%s1193_s22 + $0x80] sm:$0xff] }
 0x15c   : >> { %744 = vst [vmem:[%s1189_s11 + $0x70] sm:$0xff] %v743_v43  ;;  %v749_v46 = vld [vmem:[%s1193_s22 + $0x88] sm:$0xff]  ;;  %746 = vst [vmem:[%s1189_s11 + $0x78] sm:$0xff] %v745_v44  ;;  %v751_v47 = vld [vmem:[%s1193_s22 + $0x90] sm:$0xff] }
 0x15d   : >> { %748 = vst [vmem:[%s1189_s11 + $0x80] sm:$0xff] %v747_v45  ;;  %750 = vst [vmem:[%s1189_s11 + $0x88] sm:$0xff] %v749_v46  ;;  %v753_v48 = vld [vmem:[%s1193_s22 + $0x98] sm:$0xff]  ;;  %v755_v49 = vld [vmem:[%s1193_s22 + $0xa0] sm:$0xff] }
 0x15e   : >> { %752 = vst [vmem:[%s1189_s11 + $0x90] sm:$0xff] %v751_v47  ;;  %754 = vst [vmem:[%s1189_s11 + $0x98] sm:$0xff] %v753_v48  ;;  %v757_v50 = vld [vmem:[%s1193_s22 + $0xa8] sm:$0xff]  ;;  %v759_v51 = vld [vmem:[%s1193_s22 + $0xb0] sm:$0xff] }
 0x15f   : >> { %756 = vst [vmem:[%s1189_s11 + $0xa0] sm:$0xff] %v755_v49  ;;  %v761_v52 = vld [vmem:[%s1193_s22 + $0xb8] sm:$0xff]  ;;  %s768_s22 = scalar_lea.vmem %s1409_s6, %s766_s23 [#allocation2]   ;;  %758 = vst [vmem:[%s1189_s11 + $0xa8] sm:$0xff] %v757_v50 }
 0x160   : >> { %760 = vst [vmem:[%s1189_s11 + $0xb0] sm:$0xff] %v759_v51  ;;  %762 = vst [vmem:[%s1189_s11 + $0xb8] sm:$0xff] %v761_v52  ;;  %s1561_s11 = smov %s769_s24 }
 0x161 PF: > { %1113 = sdivrem.u32 %s1570_s9, 24 }
 0x162   : > { %s959_s25 = smul.u32 192, %s1448_s17 }
 0x164   : > { %s774_s26 = scalar_lea.vmem %s1409_s6, %s959_s25 [#allocation2]   ;;  %s776_s27 = scalar_lea.vmem %s1442_s14, %s959_s25  }
 0x16a   : > { %s1114_s28 = spop.drf %1113 }
 0x16b   : > { %p961_p0 = scmp.le.s32.totalorder %s1114_s28, 0 }
 0x16c   : > { %s1203_s29 = smov (!%p961_p0), %s776_s27   ;;  %s1207_s30 = smov (!%p961_p0), %s774_s26  }
 0x16d   : > { %875 = sbr.rel (%p961_p0) target bundleno = 382 (0x17e), region = 126  ;;  %s1211_s4 = smov (!%p961_p0), 0  }
 0x16e   : > { %s1215_s5 = smov (!%p961_p0), 0  }
 0x174 LB: >> { %v786_v53 = vld [vmem:[%s1209_s30] sm:$0xff]  ;;  %s788_s3 = sadd.s32 1, %s1213_s4  ;;  %s780_s5 = sadd.s32 1, %s1217_s5   ;;  %s1217_s5 = sphi %s1215_s5, %s780_s5   ;;  %s1213_s4 = sphi %s1211_s4, %s1212_s4   ;;  %s1209_s30 = sphi %s1207_s30, %s793_s30   ;;  %s1205_s29 = sphi %s1203_s29, %s794_s29  }
 0x175   : >> { %787 = vst [vmem:[%s1205_s29] sm:$0xff] %v786_v53  ;;  %p789_p1 = scmp.ge.s32.totalorder %s788_s3, %s1114_s28  ;;  %p779_p2 = scmp.ge.s32.totalorder %s780_s5, %s1114_s28 }
 0x177   : >> { %s1574_s3 = smov (%p789_p1, %s788_s3), 0  ;;  %782 = sbr.rel (!%p779_p2) target bundleno = 372 (0x174), region = 132 }
 0x178   : >> { %s962_s6 = sshll.u32 %s1574_s3, 3  ;;  %s1212_s4 = smov %s1574_s3  }
 0x179   : >> { %s793_s30 = scalar_lea.vmem %s774_s26, %s962_s6 [#allocation2]   ;;  %s794_s29 = scalar_lea.vmem %s776_s27, %s962_s6  }
 0x17e PF: > { %s12_s13 = sadd.s32 1, %s1185_s13   ;;  %s1563_s9 = smov %s1173_s10 }
 0x17f   : > { %p9_p3 = scmp.ge.s32.totalorder %s12_s13, 4   ;;  %s1564_s10 = smov %s1276_s19 }
 0x180   : > { %s1565_s11 = smov %s1181_s12  ;;  %s1566_s12 = smov %s1568_s15 }
 0x181   :  { %11 = sbr.rel (!%p9_p3) target bundleno = 3 (0x3), region = 143 }

</bundles_post_ra>
